<compile_context>
chip_gen: v7x
topology: tpu7x:2x2x1
jax: 0.10.0
libtpu: 0.0.40
codegen_flags: <defaults>
</compile_context>

<pallas_src>
import math
from functools import partial

import jax
import jax.numpy as jnp
import numpy as np
from jax.experimental import pallas as pl
from jax.experimental.pallas import tpu as pltpu

_SMALL_K = 4  # contractions at/below this width run as VPU broadcast-FMAs


def _mlp_kernel(num_layers, *refs):
    """refs = (xT_ref, w0, b0, w1, b1, ..., w_{L-1}, b_{L-1}, oT_ref).

    Activations are (features, batch_tile): features on sublanes, batch on the
    128-wide lane axis, so every layer and the final store are lane-dense.
    """
    xT_ref = refs[0]
    oT_ref = refs[-1]
    params = refs[1:-1]

    h = xT_ref[...]  # (in_dim, tile_n) f32
    for layer in range(num_layers):
        w_ref = params[2 * layer]
        b = params[2 * layer + 1][...]  # (out_i, 1) f32
        if len(w_ref.shape) == 3:
            # Tiny-K layer (e.g. input_size == 2), pre-split in the wrapper to
            # (k, out_i, 1).  Broadcast-FMAs on the VPU; no MXU push/pop
            # latency and no per-step lane-column extraction.
            k_dim, out_i, _ = w_ref.shape
            acc = jnp.broadcast_to(b, (out_i, h.shape[1]))
            for k in range(k_dim):
                acc = acc + w_ref[k] * h[k:k + 1, :]
            h = acc
        else:
            # Lane-dense MXU matmul: (out_i, in_i) @ (in_i, tile_n).
            # Weights were cast to the matmul dtype (bf16 on v6e/v7x) once in
            # the wrapper; accumulation and bias add stay f32.
            w = w_ref[...]
            h = jnp.dot(w, h.astype(w.dtype),
                        preferred_element_type=jnp.float32) + b
        if layer != num_layers - 1:
            h = jnp.maximum(h, 0.0)  # ReLU on all but the final Linear
    oT_ref[...] = h.astype(oT_ref.dtype)


def _const_index_map(ndim):
    zeros = (0,) * ndim
    return lambda i: zeros


def _device_kind():
    try:
        return jax.devices()[0].device_kind.lower()
    except Exception:
        return ""


def _is_pre_v6_tpu(kind):
    return any(tag in kind for tag in ("v2", "v3", "v4", "v5 lite", "v5lite", "v5e"))


def _choose_tile_n(N, tile_n, old_gen):
    if tile_n is None:
        # Big tiles amortize the ~0.35 us fixed per-grid-step overhead, but:
        #  * cap at 1024 (512 on v5e/older) to bound (32, tile_n) activation
        #    vreg pressure (spill stores hit v5e's single vst slot first),
        #  * shrink until the grid keeps >= 2 steps so the "parallel" axis can
        #    shard across both v7x TensorCores.
        tile_n = 512 if old_gen else 1024
        while tile_n > 128 and pl.cdiv(N, tile_n) < 2:
            tile_n //= 2
    tile_n = max(128, int(tile_n))
    tile_n = ((tile_n + 127) // 128) * 128  # lane-aligned -> unmasked stores
    return tile_n


def mlp_forward(x, weights, biases, *, tile_n=None, matmul_dtype=None,
                return_transposed=False):
    """Fused MLP forward.

    x:          (N, input_size) f32
    weights[i]: (out_i, in_i)   f32  (PyTorch nn.Linear layout)
    biases[i]:  (out_i,) or (out_i, 1) f32
    Returns (N, output_size) f32, or (output_size, N) if return_transposed.
    """
    N, in_dim = x.shape
    out_dim = weights[-1].shape[0]
    num_layers = len(weights)

    kind = _device_kind()
    old_gen = _is_pre_v6_tpu(kind)
    if matmul_dtype is None:
        # bf16 MXU inputs (f32 accumulation) on v6e/v7x; pure f32 on v5e/older.
        matmul_dtype = jnp.float32 if old_gen else jnp.bfloat16

    tile_n = _choose_tile_n(N, tile_n, old_gen)
    n_blocks = pl.cdiv(N, tile_n)
    n_pad = n_blocks * tile_n

    # Batch-on-lanes: single transpose (+ ragged-tail pad) in the wrapper.
    xT = x.T
    if n_pad != N:
        xT = jnp.pad(xT, ((0, 0), (0, n_pad - N)))

    in_specs = [pl.BlockSpec((in_dim, tile_n), lambda i: (0, i))]
    args = [xT]
    for w, b in zip(weights, biases):
        w = jnp.asarray(w, jnp.float32)
        b = jnp.asarray(b, jnp.float32).reshape(w.shape[0], 1)
        if w.shape[1] <= _SMALL_K:
            # Pre-split tiny-K weights into per-input-column (out, 1) slabs so
            # the kernel's broadcast-FMA path needs no lane extraction.
            w = w.T[:, :, None]                       # (k, out, 1) f32
        else:
            w = w.astype(matmul_dtype)                # bf16 on v6e/v7x
        # Full-array parameter blocks, constant index maps: loaded once,
        # resident in VMEM across all grid steps.
        in_specs.append(pl.BlockSpec(w.shape, _const_index_map(w.ndim)))
        in_specs.append(pl.BlockSpec(b.shape, _const_index_map(b.ndim)))
        args.append(w)
        args.append(b)

    out_spec = pl.BlockSpec((out_dim, tile_n), lambda i: (0, i))

    oT = pl.pallas_call(
        partial(_mlp_kernel, num_layers),
        out_shape=jax.ShapeDtypeStruct((out_dim, n_pad), jnp.float32),
        grid_spec=pl.GridSpec(
            grid=(n_blocks,),
            in_specs=in_specs,
            out_specs=out_spec,
        ),
        compiler_params=pltpu.CompilerParams(
            # Independent batch tiles shard across v7x's two TensorCores;
            # the tile policy keeps n_blocks >= 2 whenever N allows.
            dimension_semantics=("parallel",),
        ),
    )(*args)

    oT = oT[:, :N]
    if return_transposed:
        return oT          # (out_dim, N): lets a consumer skip the transpose
    return oT.T            # (N, out_dim)


def init_params(key, layer_dims):
    """Xavier-normal weights, zero biases (matches nn.init.xavier_normal_ /
    constant_(bias, 0) in MLP.init_weights).  Weights kept as (out, in)."""
    weights, biases = [], []
    for fan_in, fan_out in zip(layer_dims[:-1], layer_dims[1:]):
        key, sub = jax.random.split(key)
        std = math.sqrt(2.0 / (fan_in + fan_out))
        w = std * jax.random.normal(sub, (fan_out, fan_in), dtype=jnp.float32)
        b = jnp.zeros((fan_out, 1), dtype=jnp.float32)
        weights.append(w)
        biases.append(b)
    return weights, biases


def mlp_reference(x, weights, biases):
    h = x
    n = len(weights)
    for i, (w, b) in enumerate(zip(weights, biases)):
        h = h @ w.T + b.reshape(1, -1)
        if i != n - 1:
            h = jnp.maximum(h, 0.0)
    return h


if __name__ == "__main__":
    # Module config (consistent with the PINN constructor):
    #   size = [32, 32], input_size = 2 (cat([t, x])), output_size = 4
    size = [32, 32]
    input_size = 2
    output_size = 4
    layer_dims = [input_size] + size + [output_size]

    key = jax.random.PRNGKey(0)
    key, xkey = jax.random.split(key)
    weights, biases = init_params(key, layer_dims)

    # Deliberately not a multiple of the tile to exercise ragged-tail padding;
    # the adaptive tile policy still yields >= 2 grid steps here.
    N = 300
    x = jax.random.uniform(xkey, (N, input_size), dtype=jnp.float32) * 2.0 - 1.0

    ref = mlp_reference(x, weights, biases)

    # 1) Pure-f32 MXU path: tight check against the jnp reference.
    out_f32 = mlp_forward(x, weights, biases, matmul_dtype=jnp.float32)
    out_f32 = jax.block_until_ready(out_f32)
    np.testing.assert_allclose(np.asarray(out_f32), np.asarray(ref),
                               rtol=1e-5, atol=1e-5)

    # 2) Auto path (bf16 MXU inputs with f32 accumulation on v6e/v7x).
    out = mlp_forward(x, weights, biases)
    out = jax.block_until_ready(out)
    np.testing.assert_allclose(np.asarray(out), np.asarray(ref),
                               rtol=5e-2, atol=5e-2)

    # TODO(synk): training parts of the module (LBFGS optimizer, autograd-based
    # KdV / l_u PDE residuals, loss assembly, plotting) are out of scope for
    # this forward-pass kernel.
    print("KERNEL_OK")
</pallas_src>

<mosaic_0001>
module attributes {stable_mosaic.version = 11 : i64} {
  func.func @_mlp_kernel(%arg0: i32, %arg1: memref<2x256xf32, #tpu.memory_space<vmem>>, %arg2: memref<2x32x1xf32, #tpu.memory_space<vmem>>, %arg3: memref<32x1xf32, #tpu.memory_space<vmem>>, %arg4: memref<32x32xf32, #tpu.memory_space<vmem>>, %arg5: memref<32x1xf32, #tpu.memory_space<vmem>>, %arg6: memref<4x32xf32, #tpu.memory_space<vmem>>, %arg7: memref<4x1xf32, #tpu.memory_space<vmem>>, %arg8: memref<4x256xf32, #tpu.memory_space<vmem>>) attributes {dimension_semantics = [#tpu.dimension_semantics<parallel>], iteration_bounds = array<i64: 2>, scalar_prefetch = 0 : i64, scratch_operands = 0 : i64, tpu.core_type = #tpu.core_type<tc>, window_params = [{transform_indices = @transform_0, window_bounds = array<i64: 2, 256>}, {pipeline_mode = #tpu.pipeline_mode<synchronous>, transform_indices = @transform_1, window_bounds = array<i64: 2, 32, 1>}, {pipeline_mode = #tpu.pipeline_mode<synchronous>, transform_indices = @transform_2, window_bounds = array<i64: 32, 1>}, {pipeline_mode = #tpu.pipeline_mode<synchronous>, transform_indices = @transform_3, window_bounds = array<i64: 32, 32>}, {pipeline_mode = #tpu.pipeline_mode<synchronous>, transform_indices = @transform_4, window_bounds = array<i64: 32, 1>}, {pipeline_mode = #tpu.pipeline_mode<synchronous>, transform_indices = @transform_5, window_bounds = array<i64: 4, 32>}, {pipeline_mode = #tpu.pipeline_mode<synchronous>, transform_indices = @transform_6, window_bounds = array<i64: 4, 1>}, {transform_indices = @transform_7, window_bounds = array<i64: 4, 256>}]} {
    %c0 = arith.constant 0 : index
    %c0_0 = arith.constant 0 : index
    %0 = vector.load %arg1[%c0, %c0_0] : memref<2x256xf32, #tpu.memory_space<vmem>>, vector<2x256xf32>
    %c0_1 = arith.constant 0 : index
    %c0_2 = arith.constant 0 : index
    %1 = vector.load %arg3[%c0_1, %c0_2] : memref<32x1xf32, #tpu.memory_space<vmem>>, vector<32x1xf32>
    %2 = vector.shape_cast %1 : vector<32x1xf32> to vector<32x1xf32>
    %3 = vector.broadcast %2 : vector<32x1xf32> to vector<32x256xf32>
    %c0_3 = arith.constant 0 : index
    %c0_4 = arith.constant 0 : index
    %c0_5 = arith.constant 0 : index
    %4 = vector.load %arg2[%c0_3, %c0_4, %c0_5] : memref<2x32x1xf32, #tpu.memory_space<vmem>>, vector<1x32x1xf32>
    %5 = vector.shape_cast %4 : vector<1x32x1xf32> to vector<32x1xf32>
    %6 = vector.extract_strided_slice %0 {offsets = [0, 0], sizes = [1, 256], strides = [1, 1]} : vector<2x256xf32> to vector<1x256xf32>
    %7 = vector.broadcast %5 : vector<32x1xf32> to vector<32x256xf32>
    %8 = vector.broadcast %6 : vector<1x256xf32> to vector<32x256xf32>
    %9 = arith.mulf %7, %8 : vector<32x256xf32>
    %10 = arith.addf %3, %9 : vector<32x256xf32>
    %c1 = arith.constant 1 : index
    %c0_6 = arith.constant 0 : index
    %c0_7 = arith.constant 0 : index
    %11 = vector.load %arg2[%c1, %c0_6, %c0_7] : memref<2x32x1xf32, #tpu.memory_space<vmem>>, vector<1x32x1xf32>
    %12 = vector.shape_cast %11 : vector<1x32x1xf32> to vector<32x1xf32>
    %13 = vector.extract_strided_slice %0 {offsets = [1, 0], sizes = [1, 256], strides = [1, 1]} : vector<2x256xf32> to vector<1x256xf32>
    %14 = vector.broadcast %12 : vector<32x1xf32> to vector<32x256xf32>
    %15 = vector.broadcast %13 : vector<1x256xf32> to vector<32x256xf32>
    %16 = arith.mulf %14, %15 : vector<32x256xf32>
    %17 = arith.addf %10, %16 : vector<32x256xf32>
    %cst = arith.constant 0.000000e+00 : f32
    %18 = vector.broadcast %cst : f32 to vector<32x256xf32>
    %19 = arith.maximumf %17, %18 : vector<32x256xf32>
    %c0_8 = arith.constant 0 : index
    %c0_9 = arith.constant 0 : index
    %20 = vector.load %arg5[%c0_8, %c0_9] : memref<32x1xf32, #tpu.memory_space<vmem>>, vector<32x1xf32>
    %c0_10 = arith.constant 0 : index
    %c0_11 = arith.constant 0 : index
    %21 = vector.load %arg4[%c0_10, %c0_11] : memref<32x32xf32, #tpu.memory_space<vmem>>, vector<32x32xf32>
    %cst_12 = arith.constant dense<0.000000e+00> : vector<32x256xf32>
    %22 = tpu.matmul %21, %19, %cst_12 {dimension_numbers = #tpu.dot_dimension_numbers<[1], [0], [0], [1], [0, 0, 1, 1], [], []>} : vector<32x32xf32>, vector<32x256xf32>, vector<32x256xf32> -> vector<32x256xf32>
    %23 = vector.broadcast %20 : vector<32x1xf32> to vector<32x256xf32>
    %24 = arith.addf %22, %23 : vector<32x256xf32>
    %cst_13 = arith.constant 0.000000e+00 : f32
    %25 = vector.broadcast %cst_13 : f32 to vector<32x256xf32>
    %26 = arith.maximumf %24, %25 : vector<32x256xf32>
    %c0_14 = arith.constant 0 : index
    %c0_15 = arith.constant 0 : index
    %27 = vector.load %arg7[%c0_14, %c0_15] : memref<4x1xf32, #tpu.memory_space<vmem>>, vector<4x1xf32>
    %c0_16 = arith.constant 0 : index
    %c0_17 = arith.constant 0 : index
    %28 = vector.load %arg6[%c0_16, %c0_17] : memref<4x32xf32, #tpu.memory_space<vmem>>, vector<4x32xf32>
    %cst_18 = arith.constant dense<0.000000e+00> : vector<4x256xf32>
    %29 = tpu.matmul %28, %26, %cst_18 {dimension_numbers = #tpu.dot_dimension_numbers<[1], [0], [0], [1], [0, 0, 1, 1], [], []>} : vector<4x32xf32>, vector<32x256xf32>, vector<4x256xf32> -> vector<4x256xf32>
    %30 = vector.broadcast %27 : vector<4x1xf32> to vector<4x256xf32>
    %31 = arith.addf %29, %30 : vector<4x256xf32>
    %c0_19 = arith.constant 0 : index
    %c0_20 = arith.constant 0 : index
    %32 = vector.load %arg8[%c0_19, %c0_20] : memref<4x256xf32, #tpu.memory_space<vmem>>, vector<4x256xf32>
    tpu.vector_store %arg8[%c0_19, %c0_20], %31 {strides = array<i32>} : memref<4x256xf32, #tpu.memory_space<vmem>>, vector<4x256xf32>,
    return
  }
  func.func @transform_0(%arg0: i32) -> (i32, i32) {
    %c0_i32 = arith.constant 0 : i32
    %c0_i32_0 = arith.constant 0 : i32
    return %c0_i32, %arg0 : i32, i32
  }
  func.func @transform_1(%arg0: i32) -> (i32, i32, i32) {
    %c0_i32 = arith.constant 0 : i32
    %c0_i32_0 = arith.constant 0 : i32
    %c0_i32_1 = arith.constant 0 : i32
    %c0_i32_2 = arith.constant 0 : i32
    return %c0_i32, %c0_i32_0, %c0_i32_1 : i32, i32, i32
  }
  func.func @transform_2(%arg0: i32) -> (i32, i32) {
    %c0_i32 = arith.constant 0 : i32
    %c0_i32_0 = arith.constant 0 : i32
    %c0_i32_1 = arith.constant 0 : i32
    return %c0_i32, %c0_i32_0 : i32, i32
  }
  func.func @transform_3(%arg0: i32) -> (i32, i32) {
    %c0_i32 = arith.constant 0 : i32
    %c0_i32_0 = arith.constant 0 : i32
    %c0_i32_1 = arith.constant 0 : i32
    return %c0_i32, %c0_i32_0 : i32, i32
  }
  func.func @transform_4(%arg0: i32) -> (i32, i32) {
    %c0_i32 = arith.constant 0 : i32
    %c0_i32_0 = arith.constant 0 : i32
    %c0_i32_1 = arith.constant 0 : i32
    return %c0_i32, %c0_i32_0 : i32, i32
  }
  func.func @transform_5(%arg0: i32) -> (i32, i32) {
    %c0_i32 = arith.constant 0 : i32
    %c0_i32_0 = arith.constant 0 : i32
    %c0_i32_1 = arith.constant 0 : i32
    return %c0_i32, %c0_i32_0 : i32, i32
  }
  func.func @transform_6(%arg0: i32) -> (i32, i32) {
    %c0_i32 = arith.constant 0 : i32
    %c0_i32_0 = arith.constant 0 : i32
    %c0_i32_1 = arith.constant 0 : i32
    return %c0_i32, %c0_i32_0 : i32, i32
  }
  func.func @transform_7(%arg0: i32) -> (i32, i32) {
    %c0_i32 = arith.constant 0 : i32
    %c0_i32_0 = arith.constant 0 : i32
    return %c0_i32, %arg0 : i32, i32
  }
}

</mosaic_0001>

<bundles_post_ra>
// kernel: tpu_custom_call.1
= control target key start
LH: loop header
LB: loop body
LE: loop exit
PB: predicated region body
PF: predicated region fallthrough
CT: control target
= control target key end

     0   :  { %12 = vsyncpa [#allocation3], 0  ;;  %s1092_s0 = inlined_call_operand.vmem [shape: f32[2,512], index: 0, kind: input, shape index: {}]   ;;  %s1093_s1 = inlined_call_operand.vmem [shape: f32[2,32,1], index: 1, kind: input, shape index: {}]   ;;  %s1094_s2 = inlined_call_operand.vmem [shape: f32[32,1], index: 2, kind: input, shape index: {}]   ;;  %s1095_s3 = inlined_call_operand.vmem [shape: f32[32,32], index: 3, kind: input, shape index: {}]   ;;  %s1096_s4 = inlined_call_operand.vmem [shape: f32[32,1], index: 4, kind: input, shape index: {}]   ;;  %s1097_s5 = inlined_call_operand.vmem [shape: f32[4,32], index: 5, kind: input, shape index: {}]   ;;  %s1098_s6 = inlined_call_operand.vmem [shape: f32[4,1], index: 6, kind: input, shape index: {}]   ;;  %s1099_s7 = inlined_call_operand.hbm [shape: f32[4,512], index: 7, kind: output, shape index: {}]  }
   0x1   :  { %14 = vsyncpa [#allocation3 + $0x1], 0  ;;  %s917_s24 = smov 0   ;;  %s919_s25 = smov 0  }
   0x2   :  { %s921_s26 = smov 0   ;;  %s923_s27 = smov 0  }
   0x3 LB: > { %s938_s28 = sadd.s32 4294967295, %s872_s27   ;;  %s729_s29 = sadd.s32 4294967294, %s872_s27   ;;  %s872_s27 = sphi %s923_s27, %s1105_s27   ;;  %s868_s26 = sphi %s921_s26, %s1104_s26   ;;  %s864_s25 = sphi %s919_s25, %s1103_s25   ;;  %s860_s24 = sphi %s917_s24, %s1102_s24  }
   0x4   : > { %s942_s30 = sadd.s32 1, %s872_s27   ;;  %s179_s8 = sadd.s32 1, %s868_s26 }
   0x5   : > { %s176_s9 = ssub.s32 %s872_s27, %s942_s30  ;;  %p189_p0 = scmp.ne.s32.totalorder %s868_s26, %s864_s25 }
   0x6   : > { %p177_p1 = scmp.eq.s32.totalorder %s176_s9, 0  ;;  %p190_p2 = scmp.eq.s32.totalorder %s938_s28, 1 }
   0x7   : > { %p195_p3 = scmp.ne.s32.totalorder %s864_s25, %s860_s24  ;;  %p196_p4 = scmp.eq.s32.totalorder %s729_s29, 1 }
   0x8   : > { %s953_s10 = scalar_select %p177_p1, %s868_s26, %s179_s8  }
   0x9   : > { %p955_p5 = por %p190_p2, %p189_p0  ;;  %p959_p6 = por %p196_p4, %p195_p3 }
   0xa   : > { %p732_p7 = scmp.ge.s32.totalorder %s872_s27, 1  ;;  %p241_p8 = scmp.lt.s32.totalorder %s872_s27, 3 }
   0xc   : > { %p242_p9 = pnand %p732_p7, %p241_p8 }
   0xd   : > { %v305_v0 = vld [vmem:[%s1093_s1] sm:$0xff] (!%p242_p9)  ;;  %v874_v2 = vmov (!%p242_p9), 0   ;;  %v306_v3 = vld [vmem:[%s1093_s1 + $0x8] sm:$0xff] (!%p242_p9)  ;;  %v307_v7 = vld [vmem:[%s1093_s1 + $0x10] sm:$0xff] (!%p242_p9)  ;;  %v875_v18 = vmov (!%p242_p9), 0.0   ;;  %s734_s19 = sshll.u32 (!%p242_p9), %s938_s28, 1  ;;  %v330_v19 = vlaneseq (!%p242_p9) }
   0xe   : > { %245 = sbr.rel (%p242_p9) target bundleno = 641 (0x281), region = 48  ;;  %v281_v1 = vld [vmem:[%s1094_s2] sm:$0xff] (!%p242_p9)  ;;  %809 = vset.pattern.permute.xlu1 (!%p242_p9), %v874_v2  ;;  %808 = vset.pattern.permute.xlu0 (!%p242_p9), %v874_v2  ;;  %v282_v4 = vld [vmem:[%s1094_s2 + $0x8] sm:$0xff] (!%p242_p9)  ;;  %v308_v8 = vld [vmem:[%s1093_s1 + $0x18] sm:$0xff] (!%p242_p9)  ;;  %p274_p10 = scmp.lt.s32.totalorder (!%p242_p9), %s734_s19, 3  ;;  %vm459_vm0 = vcmask (!%p242_p9), 261120  }
   0xf   : > { %311 = vperm.xlu0 (!%p242_p9), %808, %v305_v0   ;;  %287 = vperm.xlu1 (!%p242_p9), %809, %v281_v1   ;;  %v736_v5 = vld [vmem:[%s1093_s1 + $0x20] sm:$0xff] (!%p242_p9)  ;;  %v737_v6 = vld [vmem:[%s1093_s1 + $0x28] sm:$0xff] (!%p242_p9)  ;;  %v283_v9 = vld [vmem:[%s1094_s2 + $0x10] sm:$0xff] (!%p242_p9)  ;;  %v331_v20 = vshrl.u32 (!%p242_p9), %v330_v19, 7  ;;  %s750_s22 = sshll.u32 (!%p242_p9), %s938_s28, 7  ;;  %s876_s28 = smov (!%p242_p9), [#allocation2]  }
  0x10   : > { %v284_v10 = vld [vmem:[%s1094_s2 + $0x18] sm:$0xff] (!%p242_p9)  ;;  %v738_v11 = vld [vmem:[%s1093_s1 + $0x30] sm:$0xff] (!%p242_p9)  ;;  %v431_v13 = vld [vmem:[%s1096_s4] sm:$0xff] (!%p242_p9)  ;;  %536 = vmatprep.mubr.f32.mxu0 (!%p242_p9), %v875_v18  ;;  %643 = vmatprep.mubr.f32.mxu1 (!%p242_p9), %v875_v18  ;;  %s1050_s13 = scalar_lea.hbm (!%p242_p9), %s1099_s7, %s750_s22  ;;  %s814_s16 = sshll.u32 (!%p242_p9), %s876_s28, 4  ;;  %s815_s16 = int_to_ptr.vmem [resolvable:$false] %s814_s16 }
  0x11   : > { %v739_v12 = vld [vmem:[%s1093_s1 + $0x38] sm:$0xff] (!%p242_p9)  ;;  %v432_v14 = vld [vmem:[%s1096_s4 + $0x8] sm:$0xff] (!%p242_p9)  ;;  %v433_v15 = vld [vmem:[%s1096_s4 + $0x10] sm:$0xff] (!%p242_p9)  ;;  %v332_v21 = vsub.s32 (!%p242_p9), 0, %v331_v20  ;;  %v336_v22 = vsub.s32 (!%p242_p9), 2, %v331_v20  ;;  %v391_v26 = vsub.s32 (!%p242_p9), 1, %v331_v20 }
  0x12   : > { %v434_v16 = vld [vmem:[%s1096_s4 + $0x18] sm:$0xff] (!%p242_p9)  ;;  %v569_v17 = vld [vmem:[%s1098_s6] sm:$0xf] (!%p242_p9)  ;;  %v395_v27 = vsub.s32 (!%p242_p9), 3, %v331_v20  ;;  %s816_s17 = scalar_lea.vmem (!%p242_p9), %s815_s16, 256 }
  0x13   : > { %316 = vperm.xlu0 (!%p242_p9), %808, %v306_v3   ;;  %292 = vperm.xlu1 (!%p242_p9), %809, %v282_v4  }
  0x15   : > { %s1107_s19 = smov (!%p274_p10, %s734_s19), 3 }
  0x16   : > { %s735_s20 = sshll.u32 %s1107_s19, 1 }
  0x17   : > { %371 = vperm.xlu0 %808, %v736_v5   ;;  %376 = vperm.xlu1 %809, %v737_v6   ;;  %s277_s23 = scalar_lea.vmem %s1092_s0, %s735_s20  ;;  %s270_s20 = sand.u32 1, %s864_s25  }
  0x18   : > { %v280_v23 = vld [vmem:[%s277_s23] sm:$0xf]  ;;  %s733_s21 = sshll.u32 %s270_s20, 3  ;;  %s656_s14 = scalar_lea.sflag [#allocation3], %s270_s20 }
  0x19   : > { %v333_v24 = vrot.slane %v280_v23, %v332_v21  ;;  %v337_v25 = vrot.slane %v280_v23, %v336_v22  ;;  %v392_v32 = vrot.slane %v280_v23, %v391_v26  ;;  %v396_v33 = vrot.slane %v280_v23, %v395_v27  ;;  %v435_v27 = vld [vmem:[%s1095_s3] sm:$0xff]  ;;  %s272_s23 = scalar_lea.vmem [#allocation2], %s733_s21 }
  0x1a   : > { %s670_s29 = sshll.u32 %s272_s23, 4  ;;  %s1052_s29 = int_to_ptr.vmem [resolvable:$true] %s670_s29 }
  0x1b   : > { %321 = vperm.xlu0 %808, %v307_v7   ;;  %326 = vperm.xlu1 %809, %v308_v8   ;;  %v343_v29 = vrot.slane %v333_v24, %v332_v21  ;;  %v347_v30 = vrot.slane %v337_v25, %v332_v21  ;;  %v402_v40 = vrot.slane %v392_v32, %v391_v26  ;;  %s810_s15 = scalar_lea.vmem %s1052_s29, 128  ;;  %p817_p0 = scmp.lt.s32.totalorder %s1052_s29, %s815_s16 }
  0x1c   : > { %v406_v41 = vrot.slane %v396_v33, %v391_v26  ;;  %p811_p11 = scmp.ne.s32.totalorder %s1052_s29, %s810_s15  ;;  %p818_p1 = scmp.lt.s32.totalorder %s816_s17, %s810_s15 }
  0x1e   : > { %p812_p12 = pnand %p811_p11, %p955_p5  ;;  %p819_p2 = por %p818_p1, %p817_p0 }
  0x1f   : > { %297 = vperm.xlu0 %808, %v283_v9   ;;  %302 = vperm.xlu1 %809, %v284_v10  }
  0x20   : > { %p813_p13 = pneg %p812_p12 }
  0x22   : > { %p820_p3 = pnand %p819_p2, %p813_p13 }
  0x23   : > { %381 = vperm.xlu0 %808, %v738_v11   ;;  %386 = vperm.xlu1 %809, %v739_v12  }
  0x27   : > { %441 = vperm.xlu0 %808, %v431_v13   ;;  %446 = vperm.xlu1 %809, %v432_v14  }
  0x2b   : > { %451 = vperm.xlu0 %808, %v433_v15   ;;  %456 = vperm.xlu1 %809, %v434_v16  }
  0x2f   : > { %573 = vperm.xlu0 %808, %v569_v17  }
  0x8e   : > { %v312_v28 = vpop.permute.xlu0 %311  ;;  %v288_v31 = vpop.permute.xlu1 %287 }
  0x8f   : > { %v348_v34 = vmul.f32 %v343_v29, %v312_v28  ;;  %v349_v35 = vmul.f32 %v347_v30, %v312_v28  ;;  %v436_v28 = vld [vmem:[%s1095_s3 + $0x8] sm:$0xff] }
  0x91   : > { %v356_v42 = vadd.f32 %v348_v34, %v288_v31  ;;  %v357_v43 = vadd.f32 %v349_v35, %v288_v31 }
  0x92   : > { %v317_v36 = vpop.permute.xlu0 %316  ;;  %v293_v37 = vpop.permute.xlu1 %292 }
  0x93   : > { %v350_v38 = vmul.f32 %v343_v29, %v317_v36  ;;  %v351_v39 = vmul.f32 %v347_v30, %v317_v36 }
  0x95   : > { %v358_v44 = vadd.f32 %v350_v38, %v293_v37  ;;  %v359_v45 = vadd.f32 %v351_v39, %v293_v37 }
  0x96   : > { %v372_v46 = vpop.permute.xlu0 %371  ;;  %v377_v47 = vpop.permute.xlu1 %376 }
  0x97   : > { %v407_v48 = vmul.f32 %v402_v40, %v372_v46  ;;  %v408_v49 = vmul.f32 %v406_v41, %v372_v46  ;;  %v409_v50 = vmul.f32 %v402_v40, %v377_v47  ;;  %v410_v51 = vmul.f32 %v406_v41, %v377_v47 }
  0x99   : > { %v415_v52 = vadd.f32 %v407_v48, %v356_v42  ;;  %v417_v53 = vadd.f32 %v409_v50, %v358_v44  ;;  %v416_v54 = vadd.f32 %v408_v49, %v357_v43  ;;  %v418_v55 = vadd.f32 %v410_v51, %v359_v45 }
  0x9a   : > { %v322_v56 = vpop.permute.xlu0 %321  ;;  %v327_v57 = vpop.permute.xlu1 %326 }
  0x9b   : > { %v424_v58 = vmax.f32 %v416_v54, 0.0  ;;  %v426_v59 = vmax.f32 %v418_v55, 0.0  ;;  %v423_v60 = vmax.f32 %v415_v52, 0.0  ;;  %v425_v61 = vmax.f32 %v417_v53, 0.0 }
  0x9c   : > { %v352_v2 = vmul.f32 %v343_v29, %v322_v56  ;;  %v353_v3 = vmul.f32 %v347_v30, %v322_v56  ;;  %v354_v4 = vmul.f32 %v343_v29, %v327_v57  ;;  %v355_v5 = vmul.f32 %v347_v30, %v327_v57  ;;  %v437_v29 = vld [vmem:[%s1095_s3 + $0x10] sm:$0xff]  ;;  %v438_v30 = vld [vmem:[%s1095_s3 + $0x18] sm:$0xff] }
  0x9d   : > { %v751_v0 = vpack.c.bf16 %v426_v59, %v424_v58  ;;  %v753_v1 = vpack.c.bf16 %v425_v61, %v423_v60 }
  0x9e   : > { %v298_v62 = vpop.permute.xlu0 %297  ;;  %v303_v63 = vpop.permute.xlu1 %302 }
  0x9f   : > { %752 = vmatprep.subr.bf16.mxu0 %v751_v0  ;;  %v360_v6 = vadd.f32 %v352_v2, %v298_v62  ;;  %v361_v7 = vadd.f32 %v353_v3, %v298_v62  ;;  %v362_v8 = vadd.f32 %v354_v4, %v303_v63  ;;  %v363_v9 = vadd.f32 %v355_v5, %v303_v63  ;;  %v570_v62 = vld [vmem:[%s1097_s5] sm:$0xf] }
  0xa0   : > { %754 = vmatpush1.bf16.msra.mxu0 %v753_v1 }
  0xa2   : > { %v382_v10 = vpop.permute.xlu0 %381  ;;  %v387_v11 = vpop.permute.xlu1 %386 }
  0xa3   : > { %v411_v12 = vmul.f32 %v402_v40, %v382_v10  ;;  %v412_v13 = vmul.f32 %v406_v41, %v382_v10  ;;  %v413_v14 = vmul.f32 %v402_v40, %v387_v11  ;;  %v414_v15 = vmul.f32 %v406_v41, %v387_v11 }
  0xa5   : > { %v419_v16 = vadd.f32 %v411_v12, %v360_v6  ;;  %v420_v17 = vadd.f32 %v412_v13, %v361_v7  ;;  %v421_v19 = vadd.f32 %v413_v14, %v362_v8  ;;  %v422_v20 = vadd.f32 %v414_v15, %v363_v9 }
  0xa6   : > { %v442_v33 = vpop.permute.xlu0 %441  ;;  %v447_v35 = vpop.permute.xlu1 %446 }
  0xa7   : > { %v427_v21 = vmax.f32 %v419_v16, 0.0  ;;  %v428_v22 = vmax.f32 %v420_v17, 0.0  ;;  %v429_v23 = vmax.f32 %v421_v19, 0.0  ;;  %v430_v24 = vmax.f32 %v422_v20, 0.0 }
  0xa9   : > { %v755_v25 = vpack.c.bf16 %v430_v24, %v428_v22  ;;  %v757_v26 = vpack.c.bf16 %v429_v23, %v427_v21 }
  0xaa   : > { %v452_v47 = vpop.permute.xlu0 %451  ;;  %v457_v50 = vpop.permute.xlu1 %456 }
  0xab   : > { %756 = vmatprep.subr.bf16.mxu0 %v755_v25 }
  0xac   : > { %758 = vmatpush1.bf16.msra.mxu0 %v757_v26 }
  0xae   : > { %v574_v63 = vpop.permute.xlu0 %573 }
  0xaf   : > { %740 = vmatmul.mubr.msk.f32.vlgmr.msra.gmra.mrb[0].mxu0 %vm459_vm0, %v435_v27 }
  0xb0   : > { %542 = vmatprep.mubr.f32.mxu0 %v875_v18 }
  0xb3   : > { %741 = vmatmul.mubr.msk.f32.gmra.mrb[2].mxu0 %vm459_vm0, %v436_v28 }
  0xb4   : > { %548 = vmatprep.mubr.f32.mxu0 %v875_v18 }
  0xb7   : > { %742 = vmatmul.mubr.msk.f32.gmra.mrb[4].mxu0 %vm459_vm0, %v437_v29 }
  0xb8   : > { %554 = vmatprep.mubr.f32.mxu0 %v875_v18 }
  0xbb   : > { %743 = vmatmul.mubr.msk.f32.gmra.mrb[6].mxu0 %vm459_vm0, %v438_v30 }
 0x182   : > { %v538_v31 = vpop.f32.mrb[0].mxu0 }
 0x183   : > { %v540_v32 = vpop.f32.mrb[1].mxu0  ;;  %v539_v34 = vadd.f32 %v538_v31, %v442_v33 }
 0x184   : > { %v541_v36 = vadd.f32 %v540_v32, %v442_v33 }
 0x185   : > { %v561_v41 = vmax.f32 %v539_v34, 0.0 }
 0x186   : > { %v544_v37 = vpop.f32.mrb[2].mxu0  ;;  %v562_v43 = vmax.f32 %v541_v36, 0.0 }
 0x187   : > { %v545_v38 = vadd.f32 %v544_v37, %v447_v35  ;;  %v546_v39 = vpop.f32.mrb[3].mxu0 }
 0x188   : > { %v547_v40 = vadd.f32 %v546_v39, %v447_v35 }
 0x189   : > { %v563_v42 = vmax.f32 %v545_v38, 0.0 }
 0x18a   : > { %v564_v18 = vmax.f32 %v547_v40, 0.0  ;;  %v550_v44 = vpop.f32.mrb[4].mxu0 }
 0x18b   : > { %v552_v45 = vpop.f32.mrb[5].mxu0  ;;  %v761_v46 = vpack.c.bf16 %v563_v42, %v561_v41  ;;  %v551_v49 = vadd.f32 %v550_v44, %v452_v47 }
 0x18c   : > { %v759_v48 = vpack.c.bf16 %v564_v18, %v562_v43  ;;  %v553_v51 = vadd.f32 %v552_v45, %v452_v47 }
 0x18d   : > { %v565_v56 = vmax.f32 %v551_v49, 0.0 }
 0x18e   : > { %v556_v52 = vpop.f32.mrb[6].mxu0  ;;  %760 = vmatprep.subr.bf16.mxu1 %v759_v48  ;;  %v566_v58 = vmax.f32 %v553_v51, 0.0 }
 0x18f   : > { %v557_v53 = vadd.f32 %v556_v52, %v457_v50  ;;  %v558_v54 = vpop.f32.mrb[7].mxu0  ;;  %762 = vmatpush1.bf16.msra.mxu1 %v761_v46 }
 0x190   : > { %v559_v55 = vadd.f32 %v558_v54, %v457_v50 }
 0x191   : > { %v567_v57 = vmax.f32 %v557_v53, 0.0 }
 0x192   : > { %v568_v59 = vmax.f32 %v559_v55, 0.0 }
 0x193   : > { %v765_v60 = vpack.c.bf16 %v567_v57, %v565_v56 }
 0x194   : > { %v763_v61 = vpack.c.bf16 %v568_v59, %v566_v58 }
 0x196   : > { %764 = vmatprep.subr.bf16.mxu1 %v763_v61 }
 0x197   : > { %766 = vmatpush1.bf16.msra.mxu1 %v765_v60 }
 0x19a   : > { %744 = vmatmul.mubr.msk.f32.vlgmr.msra.gmra.mrb[0].mxu1 %vm459_vm0, %v570_v62 }
 0x26d   : > { %v645_v0 = vpop.f32.mrb[0].mxu1 }
 0x26e   : > { %v646_v1 = vadd.f32 %v645_v0, %v574_v63  ;;  %v647_v2 = vpop.f32.mrb[1].mxu1 }
 0x26f   : > { %v648_v3 = vadd.f32 %v647_v2, %v574_v63 }
 0x271   : > { %v652_v4 = vcombine.low %v646_v1, %v648_v3 }
 0x273   : > { %654 = vst [vmem:[%s272_s23] sm:$0xff] %v652_v4 }
 0x274   : > { %823 = shalt.err (!%p820_p3)
}
 0x275   : > { %s824_s18 = scalar_lea.hbm %s1050_s13, 128  ;;  %s828_s21 = scalar_lea.hbm %s1099_s7, 256 }
 0x276   : > { %p825_p4 = scmp.ne.s32.totalorder %s1050_s13, %s824_s18  ;;  %p829_p9 = scmp.lt.u32.totalorder %s1050_s13, %s1099_s7 }
 0x277   : > { %p830_p10 = scmp.lt.u32.totalorder %s828_s21, %s824_s18  ;;  %p832_p12 = scmp.lt.u32.totalorder %s824_s18, %s1050_s13 }
 0x278   : > { %p826_p7 = pnand %p825_p4, %p955_p5 }
 0x279   : > { %p831_p11 = por %p830_p10, %p829_p9 }
 0x27a   : > { %p827_p8 = pneg %p826_p7 }
 0x27b   : > { %p833_p13 = por %p832_p12, %p831_p11 }
 0x27d   : > { %p834_p0 = pnand %p833_p13, %p827_p8 }
 0x27f   : > { %837 = shalt.err (!%p834_p0)
}
 0x280   : > { %767 = dma.vmem_to_hbm [thread:$0]  (%p955_p5), %s1052_s29, 128, %s1050_s13, %s656_s14  }
 0x281 PF: > { %p773_p1 = scmp.ge.s32.totalorder %s872_s27, 2  ;;  %s682_s8 = sand.u32 1, %s860_s24  }
 0x282   : > { %s683_s9 = scalar_lea.sflag [#allocation3], %s682_s8 }
 0x283   : > { %p770_p2 = pnand %p773_p1, %p959_p6 }
 0x285   : > { %855 = dma.done.wait (!%p770_p2), %s683_s9, 128  }
 0x286   : > { %857 = vsyncadd (!%p770_p2), %s683_s9, 4294967168  ;;  %p17_p3 = scmp.ge.s32.totalorder %s942_s30, 4   ;;  %s1102_s24 = smov %s864_s25 }
 0x287   : > { %s1103_s25 = smov %s868_s26  ;;  %s1104_s26 = smov %s953_s10 }
 0x288   : > { %s1105_s27 = smov %s942_s30  ;;  %19 = sbr.rel (!%p17_p3) target bundleno = 3 (0x3), region = 84 }
 0x28f   :  { %688 = vsyncpa [#allocation3], 1 }
 0x290   :  { %690 = vsyncpa [#allocation3 + $0x1], 1 }

</bundles_post_ra>
